<compile_context>
chip_gen: v6e
topology: v6e:2x2x1
jax: 0.10.0
libtpu: 0.0.40
codegen_flags: <defaults>
</compile_context>

<pallas_src>
import functools

import jax
import jax.numpy as jnp
from jax import lax
from jax.experimental import pallas as pl
from jax.experimental.pallas import tpu as pltpu

_INV_SQRT2 = 0.7071067811865476  # 1/sqrt(2)


def _round_up(x, m):
    return (x + m - 1) // m * m


def _gelu_exact(h):
    # Exact (erf) GELU in f32 -- matches torch.nn.GELU() default.
    return 0.5 * h * (1.0 + lax.erf(h * _INV_SQRT2))


def _ffn_kernel_resident(x_ref, w1_ref, b1_ref, w2_ref, b2_ref, o_ref,
                         *, n_sub, sub_th):
    """Hidden dim fully resident in VMEM (grid = rows only): no accumulator scratch."""
    x = x_ref[...]
    acc = None
    for j in range(n_sub):                      # statically unrolled sub-tiles
        sl = pl.ds(j * sub_th, sub_th)
        h = jnp.dot(x, w1_ref[:, sl], preferred_element_type=jnp.float32)
        h = _gelu_exact(h + b1_ref[:, sl])      # f32 bias-add + exact GELU
        p = jnp.dot(h.astype(w2_ref.dtype), w2_ref[sl, :],
                    preferred_element_type=jnp.float32)
        acc = p if acc is None else acc + p
    o_ref[...] = (acc + b2_ref[...]).astype(o_ref.dtype)


def _ffn_kernel_tiled(x_ref, w1_ref, b1_ref, w2_ref, b2_ref, o_ref, acc_ref,
                      *, n_sub, sub_th):
    """Fallback: hidden dim tiled over grid axis 1 with an f32 VMEM accumulator."""
    k = pl.program_id(1)
    x = x_ref[...]
    for j in range(n_sub):
        sl = pl.ds(j * sub_th, sub_th)
        h = jnp.dot(x, w1_ref[:, sl], preferred_element_type=jnp.float32)
        h = _gelu_exact(h + b1_ref[:, sl])
        p = jnp.dot(h.astype(w2_ref.dtype), w2_ref[sl, :],
                    preferred_element_type=jnp.float32)
        if j == 0:
            # First contribution of this k-step: write (no zero-init round trip).
            @pl.when(k == 0)
            def _(p=p):
                acc_ref[...] = p

            @pl.when(k != 0)
            def _(p=p):
                acc_ref[...] += p
        else:
            acc_ref[...] += p

    @pl.when(k == pl.num_programs(1) - 1)
    def _():
        o_ref[...] = (acc_ref[...] + b2_ref[...]).astype(o_ref.dtype)


def _vmem_budget_bytes():
    """Usable VMEM budget for this generation, with headroom for compiler scratch."""
    cap = 64 * 1024 * 1024                      # v7x-safe fallback
    try:
        cap = int(pltpu.get_tpu_info().vmem_capacity_bytes)
    except Exception:
        pass
    return int(cap * 0.75)                      # ~96 MiB on v5e/v6e, ~48 MiB on v7x


def make_feed_forward(w1, b1, w2, b2, *, tm=512, th=1024, use_bf16_matmul=True,
                      force_hidden_tiling=False):
    """Pad/cast the FFN weights once (hoisted out of the per-call path) and return
    a jitted apply(x) closure.

    w1: (dim, hidden), b1: (hidden,), w2: (hidden, dim), b2: (dim,); x: (B, N, dim).
    """
    dim, hidden = w1.shape
    assert w2.shape == (hidden, dim) and b1.shape == (hidden,) and b2.shape == (dim,)

    compute_dtype = jnp.bfloat16 if use_bf16_matmul else jnp.dtype(w1.dtype)
    c_sz = jnp.dtype(compute_dtype).itemsize
    row_align = 16 if c_sz == 2 else 8          # bf16 sublane packing

    dim_p = _round_up(dim, 128)
    th_full = _round_up(hidden, 128)
    budget = _vmem_budget_bytes()
    tm_max = max(row_align, _round_up(tm, row_align))

    def footprint(tm_e, th_e, o_sz, resident):
        w_bufs = 1 if resident else 2           # resident weights: single buffer
        sub = 256 if th_e % 256 == 0 else 128
        return (2 * tm_e * dim_p * c_sz                     # x tiles (double buffer)
                + 2 * tm_e * dim_p * o_sz                   # out tiles
                + w_bufs * 2 * dim_p * th_e * c_sz          # W1 + W2 tiles
                + w_bufs * th_e * 4 + 2 * dim_p * 4         # b1 + b2
                + tm_e * dim_p * 4                          # f32 accumulator
                + 2 * tm_e * sub * 4)                       # live h sub-tiles

    o_sz_max = 4  # worst case: f32 activations at apply time

    # Prefer the hidden dim fully resident (weights DMA'd exactly once per call).
    if (not force_hidden_tiling
            and footprint(tm_max, th_full, o_sz_max, resident=True) <= budget):
        resident, th_eff = True, th_full
    else:
        resident = False
        th_eff = min(_round_up(th, 128), th_full)
        # Explicit feasibility check: shrink the hidden chunk, then the row tile.
        while footprint(tm_max, th_eff, o_sz_max, False) > budget and th_eff > 128:
            th_eff = max(128, _round_up(th_eff // 2, 128))
        while footprint(tm_max, th_eff, o_sz_max, False) > budget and tm_max > 2 * row_align:
            tm_max = max(row_align, _round_up(tm_max // 2, row_align))

    hid_p = th_full if resident else _round_up(hidden, th_eff)
    n_k = hid_p // th_eff
    sub_th = 256 if th_eff % 256 == 0 else 128
    n_sub = th_eff // sub_th

    # One-time weight pad + cast. Zero padding is semantically safe: padded hidden
    # columns give GELU(0 + 0) = 0 and meet zero W2 rows; padded output columns /
    # rows are sliced off after the kernel.
    w1p = jnp.pad(w1.astype(compute_dtype), ((0, dim_p - dim), (0, hid_p - hidden)))
    w2p = jnp.pad(w2.astype(compute_dtype), ((0, hid_p - hidden), (0, dim_p - dim)))
    b1p = jnp.pad(b1.astype(jnp.float32), (0, hid_p - hidden)).reshape(1, hid_p)
    b2p = jnp.pad(b2.astype(jnp.float32), (0, dim_p - dim)).reshape(1, dim_p)

    def _apply(x, w1p, b1p, w2p, b2p):
        B, N, d = x.shape
        assert d == dim, f"expected trailing dim {dim}, got {d}"
        out_dtype = x.dtype
        M = B * N

        # Row tiling: at least two row tiles when M allows, so the "parallel" row
        # axis can shard across both v7x TensorCores (harmless on v5e/v6e).
        m_al = _round_up(M, row_align)
        tm_eff = min(tm_max, m_al)
        if m_al > row_align and tm_eff >= m_al:
            tm_eff = _round_up((M + 1) // 2, row_align)
        m_p = _round_up(M, tm_eff)
        n_row = m_p // tm_eff

        x2 = jnp.pad(x.reshape(M, d).astype(compute_dtype),
                     ((0, m_p - M), (0, dim_p - dim)))

        o_sz = jnp.dtype(out_dtype).itemsize
        need = footprint(tm_eff, th_eff, o_sz, resident)
        vmem_limit = int(min(max(int(need * 1.5), 32 * 1024 * 1024),
                             max(budget, need)))

        if resident:
            kernel = functools.partial(_ffn_kernel_resident, n_sub=n_sub, sub_th=sub_th)
            grid = (n_row,)
            in_specs = [
                pl.BlockSpec((tm_eff, dim_p), lambda i: (i, 0)),                  # x rows
                pl.BlockSpec((dim_p, hid_p), lambda i: (0, 0),
                             pipeline_mode=pl.Buffered(1)),                       # W1 resident
                pl.BlockSpec((1, hid_p), lambda i: (0, 0),
                             pipeline_mode=pl.Buffered(1)),                       # b1
                pl.BlockSpec((hid_p, dim_p), lambda i: (0, 0),
                             pipeline_mode=pl.Buffered(1)),                       # W2 resident
                pl.BlockSpec((1, dim_p), lambda i: (0, 0),
                             pipeline_mode=pl.Buffered(1)),                       # b2
            ]
            out_specs = pl.BlockSpec((tm_eff, dim_p), lambda i: (i, 0))
            scratch_shapes = []
            dims = ("parallel",)
        else:
            kernel = functools.partial(_ffn_kernel_tiled, n_sub=n_sub, sub_th=sub_th)
            grid = (n_row, n_k)
            in_specs = [
                pl.BlockSpec((tm_eff, dim_p), lambda i, k: (i, 0)),               # x rows
                pl.BlockSpec((dim_p, th_eff), lambda i, k: (0, k)),               # W1 chunk
                pl.BlockSpec((1, th_eff), lambda i, k: (0, k)),                   # b1 chunk
                pl.BlockSpec((th_eff, dim_p), lambda i, k: (k, 0)),               # W2 chunk
                pl.BlockSpec((1, dim_p), lambda i, k: (0, 0),
                             pipeline_mode=pl.Buffered(1)),                       # b2 const
            ]
            out_specs = pl.BlockSpec((tm_eff, dim_p), lambda i, k: (i, 0))
            scratch_shapes = [pltpu.VMEM((tm_eff, dim_p), jnp.float32)]
            dims = ("parallel", "arbitrary")

        out2 = pl.pallas_call(
            kernel,
            out_shape=jax.ShapeDtypeStruct((m_p, dim_p), out_dtype),
            grid=grid,
            in_specs=in_specs,
            out_specs=out_specs,
            scratch_shapes=scratch_shapes,
            compiler_params=pltpu.CompilerParams(
                dimension_semantics=dims,
                vmem_limit_bytes=vmem_limit,
            ),
        )(x2, w1p, b1p, w2p, b2p)

        return out2[:M, :dim].reshape(B, N, dim)

    apply_jit = jax.jit(_apply)

    def apply(x):
        return apply_jit(x, w1p, b1p, w2p, b2p)

    return apply


def feed_forward(x, w1, b1, w2, b2, **kwargs):
    """Convenience one-shot wrapper (prefer make_feed_forward to hoist weight prep)."""
    return make_feed_forward(w1, b1, w2, b2, **kwargs)(x)


def _reference(x, w1, b1, w2, b2):
    h = x @ w1 + b1
    h = 0.5 * h * (1.0 + lax.erf(h * _INV_SQRT2))
    return h @ w2 + b2


if __name__ == "__main__":
    key = jax.random.PRNGKey(0)

    def make_params(k, dim, hidden):
        k1, kb1, k2, kb2 = jax.random.split(k, 4)
        bound1 = 1.0 / float(dim) ** 0.5
        w1 = jax.random.uniform(k1, (dim, hidden), jnp.float32, -bound1, bound1)
        b1 = jax.random.uniform(kb1, (hidden,), jnp.float32, -bound1, bound1)
        bound2 = 1.0 / float(hidden) ** 0.5
        w2 = jax.random.uniform(k2, (hidden, dim), jnp.float32, -bound2, bound2)
        b2 = jax.random.uniform(kb2, (dim,), jnp.float32, -bound2, bound2)
        return w1, b1, w2, b2

    kx1, kp1, kx2, kp2 = jax.random.split(key, 4)

    # Case 1: tiny shapes, default config (bf16 MXU + f32 acc, hidden resident).
    B, N, dim, hidden = 2, 8, 32, 64
    x = jax.random.normal(kx1, (B, N, dim), jnp.float32)
    w1, b1, w2, b2 = make_params(kp1, dim, hidden)
    ref = _reference(x, w1, b1, w2, b2)
    ffn = make_feed_forward(w1, b1, w2, b2)
    out = jax.block_until_ready(ffn(x))
    assert out.shape == (B, N, dim)
    assert jnp.allclose(out, ref, atol=5e-2, rtol=5e-2), "bf16 small mismatch"

    # Case 2: cls-token style N=197 (two row tiles), non-128 feature dims,
    # exact f32 matmul path, resident weights.
    B, N, dim, hidden = 2, 197, 96, 384
    x = jax.random.normal(kx2, (B, N, dim), jnp.float32)
    w1, b1, w2, b2 = make_params(kp2, dim, hidden)
    ref = _reference(x, w1, b1, w2, b2)
    ffn_f32 = make_feed_forward(w1, b1, w2, b2, use_bf16_matmul=False)
    out = jax.block_until_ready(ffn_f32(x))
    assert out.shape == (B, N, dim)
    assert jnp.allclose(out, ref, atol=1e-4, rtol=1e-4), "f32 resident mismatch"

    # Case 3: same problem, forced hidden tiling (accumulator fallback path, n_k=3).
    ffn_tiled = make_feed_forward(w1, b1, w2, b2, th=128, use_bf16_matmul=False,
                                  force_hidden_tiling=True)
    out = jax.block_until_ready(ffn_tiled(x))
    assert jnp.allclose(out, ref, atol=1e-4, rtol=1e-4), "f32 tiled mismatch"

    # Case 4: default bf16 config at the same shapes (looser tolerance).
    ffn_bf16 = make_feed_forward(w1, b1, w2, b2)
    out = jax.block_until_ready(ffn_bf16(x))
    assert jnp.allclose(out, ref, atol=5e-2, rtol=5e-2), "bf16 resident mismatch"

    print("KERNEL_OK")
</pallas_src>

<mosaic_0001>
module attributes {stable_mosaic.version = 11 : i64} {
  func.func @_ffn_kernel_resident(%arg0: i32, %arg1: memref<16x128xbf16, #tpu.memory_space<vmem>>, %arg2: memref<128x128xbf16, #tpu.memory_space<vmem>>, %arg3: memref<1x128xf32, #tpu.memory_space<vmem>>, %arg4: memref<128x128xbf16, #tpu.memory_space<vmem>>, %arg5: memref<1x128xf32, #tpu.memory_space<vmem>>, %arg6: memref<16x128xf32, #tpu.memory_space<vmem>>) attributes {dimension_semantics = [#tpu.dimension_semantics<parallel>], iteration_bounds = array<i64: 1>, scalar_prefetch = 0 : i64, scratch_operands = 0 : i64, tpu.core_type = #tpu.core_type<tc>, window_params = [{transform_indices = @transform_0, window_bounds = array<i64: 16, 128>}, {pipeline_mode = #tpu.pipeline_mode<synchronous>, transform_indices = @transform_1, window_bounds = array<i64: 128, 128>}, {pipeline_mode = #tpu.pipeline_mode<synchronous>, transform_indices = @transform_2, window_bounds = array<i64: 1, 128>}, {pipeline_mode = #tpu.pipeline_mode<synchronous>, transform_indices = @transform_3, window_bounds = array<i64: 128, 128>}, {pipeline_mode = #tpu.pipeline_mode<synchronous>, transform_indices = @transform_4, window_bounds = array<i64: 1, 128>}, {transform_indices = @transform_5, window_bounds = array<i64: 16, 128>}]} {
    %c0 = arith.constant 0 : index
    %c0_0 = arith.constant 0 : index
    %0 = vector.load %arg1[%c0, %c0_0] : memref<16x128xbf16, #tpu.memory_space<vmem>>, vector<16x128xbf16>
    %c0_1 = arith.constant 0 : index
    %c0_2 = arith.constant 0 : index
    %1 = vector.load %arg2[%c0_1, %c0_2] : memref<128x128xbf16, #tpu.memory_space<vmem>>, vector<128x128xbf16>
    %cst = arith.constant dense<0.000000e+00> : vector<16x128xf32>
    %2 = tpu.matmul %0, %1, %cst {dimension_numbers = #tpu.dot_dimension_numbers<[1], [0], [0], [1], [0, 0, 1, 1], [], []>} : vector<16x128xbf16>, vector<128x128xbf16>, vector<16x128xf32> -> vector<16x128xf32>
    %c0_3 = arith.constant 0 : index
    %c0_4 = arith.constant 0 : index
    %3 = vector.load %arg3[%c0_3, %c0_4] : memref<1x128xf32, #tpu.memory_space<vmem>>, vector<1x128xf32>
    %4 = vector.broadcast %3 : vector<1x128xf32> to vector<16x128xf32>
    %5 = arith.addf %2, %4 : vector<16x128xf32>
    %cst_5 = arith.constant 5.000000e-01 : f32
    %6 = vector.broadcast %cst_5 : f32 to vector<16x128xf32>
    %7 = arith.mulf %6, %5 : vector<16x128xf32>
    %cst_6 = arith.constant 0.707106769 : f32
    %8 = vector.broadcast %cst_6 : f32 to vector<16x128xf32>
    %9 = arith.mulf %5, %8 : vector<16x128xf32>
    %10 = math.erf %9 : vector<16x128xf32>
    %cst_7 = arith.constant 1.000000e+00 : f32
    %11 = vector.broadcast %cst_7 : f32 to vector<16x128xf32>
    %12 = arith.addf %11, %10 : vector<16x128xf32>
    %13 = arith.mulf %7, %12 : vector<16x128xf32>
    %14 = arith.truncf %13 : vector<16x128xf32> to vector<16x128xbf16>
    %c0_8 = arith.constant 0 : index
    %c0_9 = arith.constant 0 : index
    %15 = vector.load %arg4[%c0_8, %c0_9] : memref<128x128xbf16, #tpu.memory_space<vmem>>, vector<128x128xbf16>
    %cst_10 = arith.constant dense<0.000000e+00> : vector<16x128xf32>
    %16 = tpu.matmul %14, %15, %cst_10 {dimension_numbers = #tpu.dot_dimension_numbers<[1], [0], [0], [1], [0, 0, 1, 1], [], []>} : vector<16x128xbf16>, vector<128x128xbf16>, vector<16x128xf32> -> vector<16x128xf32>
    %c0_11 = arith.constant 0 : index
    %c0_12 = arith.constant 0 : index
    %17 = vector.load %arg5[%c0_11, %c0_12] : memref<1x128xf32, #tpu.memory_space<vmem>>, vector<1x128xf32>
    %18 = vector.broadcast %17 : vector<1x128xf32> to vector<16x128xf32>
    %19 = arith.addf %16, %18 : vector<16x128xf32>
    %c0_13 = arith.constant 0 : index
    %c0_14 = arith.constant 0 : index
    %20 = vector.load %arg6[%c0_13, %c0_14] : memref<16x128xf32, #tpu.memory_space<vmem>>, vector<16x128xf32>
    tpu.vector_store %arg6[%c0_13, %c0_14], %19 {strides = array<i32>} : memref<16x128xf32, #tpu.memory_space<vmem>>, vector<16x128xf32>,
    return
  }
  func.func @transform_0(%arg0: i32) -> (i32, i32) {
    %c0_i32 = arith.constant 0 : i32
    %c0_i32_0 = arith.constant 0 : i32
    return %arg0, %c0_i32 : i32, i32
  }
  func.func @transform_1(%arg0: i32) -> (i32, i32) {
    %c0_i32 = arith.constant 0 : i32
    %c0_i32_0 = arith.constant 0 : i32
    %c0_i32_1 = arith.constant 0 : i32
    return %c0_i32, %c0_i32_0 : i32, i32
  }
  func.func @transform_2(%arg0: i32) -> (i32, i32) {
    %c0_i32 = arith.constant 0 : i32
    %c0_i32_0 = arith.constant 0 : i32
    %c0_i32_1 = arith.constant 0 : i32
    return %c0_i32, %c0_i32_0 : i32, i32
  }
  func.func @transform_3(%arg0: i32) -> (i32, i32) {
    %c0_i32 = arith.constant 0 : i32
    %c0_i32_0 = arith.constant 0 : i32
    %c0_i32_1 = arith.constant 0 : i32
    return %c0_i32, %c0_i32_0 : i32, i32
  }
  func.func @transform_4(%arg0: i32) -> (i32, i32) {
    %c0_i32 = arith.constant 0 : i32
    %c0_i32_0 = arith.constant 0 : i32
    %c0_i32_1 = arith.constant 0 : i32
    return %c0_i32, %c0_i32_0 : i32, i32
  }
  func.func @transform_5(%arg0: i32) -> (i32, i32) {
    %c0_i32 = arith.constant 0 : i32
    %c0_i32_0 = arith.constant 0 : i32
    return %arg0, %c0_i32 : i32, i32
  }
}

</mosaic_0001>

<bundles_post_ra>
// kernel: _apply.1
= control target key start
LH: loop header
LB: loop body
LE: loop exit
PB: predicated region body
PF: predicated region fallthrough
CT: control target
= control target key end

     0   :  { %10 = vsyncpa [#allocation3], 0  ;;  %s505_s0 = inlined_call_operand.vmem [shape: bf16[16,128], index: 0, kind: input, shape index: {}]   ;;  %s506_s1 = inlined_call_operand.hbm [shape: bf16[128,128], index: 1, kind: input, shape index: {}]   ;;  %s507_s2 = inlined_call_operand.vmem [shape: f32[1,128], index: 2, kind: input, shape index: {}]   ;;  %s508_s3 = inlined_call_operand.hbm [shape: bf16[128,128], index: 3, kind: input, shape index: {}]   ;;  %s509_s4 = inlined_call_operand.vmem [shape: f32[1,128], index: 4, kind: input, shape index: {}]   ;;  %s510_s5 = inlined_call_operand.vmem [shape: f32[16,128], index: 5, kind: output, shape index: {}]  }
   0x1   :  { %11 = vsyncpa [#allocation5], 0  ;;  %s448_s18 = smov [#allocation2]  }
   0x2   :  { %s19_s19 = sshll.u32 %s448_s18, 4  ;;  %s20_s19 = int_to_ptr.vmem [resolvable:$true] %s19_s19 }
   0x3   :  { %s412_s20 = scalar_lea.vmem %s20_s19, 1024  ;;  %p417_p1 = scmp.lt.s32.totalorder %s20_s19, %s20_s19 }
   0x4   :  { %p413_p0 = scmp.ne.s32.totalorder %s20_s19, %s412_s20  ;;  %p418_p2 = scmp.lt.s32.totalorder %s412_s20, %s412_s20 }
   0x6   :  { %p419_p3 = por %p418_p2, %p417_p1 }
   0x8   :  { %p420_p4 = pnand %p419_p3, %p413_p0 }
   0xa   :  { %423 = shalt.err (!%p420_p4)
}
   0xb   :  { %s449_s21 = smov 64   ;;  %s450_s22 = smov 4  }
   0xc   :  { %25 = dma.hbm_to_vmem [thread:$0]  %s506_s1, 1024, %s20_s19, [#allocation3], %s449_s21, %s449_s21, %s450_s22  }
   0xd   :  { %s451_s25 = smov [#allocation4]  }
   0xe   :  { %s33_s26 = sshll.u32 %s451_s25, 4  ;;  %s34_s26 = int_to_ptr.vmem [resolvable:$true] %s33_s26 }
   0xf   :  { %s432_s27 = scalar_lea.vmem %s34_s26, 1024  ;;  %p437_p6 = scmp.lt.s32.totalorder %s34_s26, %s34_s26 }
  0x10   :  { %p433_p5 = scmp.ne.s32.totalorder %s34_s26, %s432_s27  ;;  %p438_p7 = scmp.lt.s32.totalorder %s432_s27, %s432_s27 }
  0x12   :  { %p439_p8 = por %p438_p7, %p437_p6 }
  0x14   :  { %p440_p9 = pnand %p439_p8, %p433_p5 }
  0x16   :  { %443 = shalt.err (!%p440_p9)
}
  0x17   :  { %39 = dma.hbm_to_vmem [thread:$0]  %s508_s3, 1024, %s34_s26, [#allocation5], %s449_s21, %s449_s21, %s450_s22  }
  0x18   :  { %444 = dma.done.wait [#allocation3], 1024  }
  0x19   :  { %445 = vsyncadd [#allocation3], 4294966272 }
  0x1a   :  { %446 = dma.done.wait [#allocation5], 1024  }
  0x1b   :  { %447 = vsyncadd [#allocation5], 4294966272  ;;  %v452_v0 = vmov 0.0   ;;  %vm453_vm0 = vmmov 0   ;;  %v383_v1 = vld [vmem:[#allocation2 + $0x38] sm:$0xff]   ;;  %v384_v2 = vld [vmem:[#allocation2 + $0x30] sm:$0xff]  }
  0x1c   :  { %337 = vmatprep.subr.bf16.mxu0 %v452_v0  ;;  %353 = vmatprep.mubr.msk.bf16.mxu0 %vm453_vm0, %v452_v0  ;;  %v385_v3 = vld [vmem:[#allocation2 + $0x28] sm:$0xff]   ;;  %v392_v4 = vld [vmem:[#allocation4 + $0x38] sm:$0xff]   ;;  %v386_v5 = vld [vmem:[#allocation2 + $0x20] sm:$0xff]  }
  0x1d   :  { %357 = vmatprep.subr.bf16.mxu1 %v452_v0  ;;  %373 = vmatprep.mubr.msk.bf16.mxu1 %vm453_vm0, %v452_v0  ;;  %v387_v6 = vld [vmem:[#allocation2 + $0x18] sm:$0xff]   ;;  %v388_v7 = vld [vmem:[#allocation2 + $0x10] sm:$0xff]   ;;  %v389_v8 = vld [vmem:[#allocation2 + $0x8] sm:$0xff]  }
  0x1e   :  { %338 = vmatpush3.bf16.msra.mxu0 %v383_v1  ;;  %358 = vmatpush3.bf16.msra.mxu1 %v392_v4  ;;  %v390_v9 = vld [vmem:[#allocation2] sm:$0xff]   ;;  %v393_v11 = vld [vmem:[#allocation4 + $0x30] sm:$0xff]   ;;  %v394_v12 = vld [vmem:[#allocation4 + $0x28] sm:$0xff]  }
  0x1f   :  { %339 = vmatprep.subr.bf16.mxu0 %v452_v0  ;;  %359 = vmatprep.subr.bf16.mxu1 %v452_v0  ;;  %v391_v10 = vld [vmem:[%s505_s0] sm:$0xff]   ;;  %v396_v14 = vld [vmem:[#allocation4 + $0x18] sm:$0xff]   ;;  %v397_v15 = vld [vmem:[#allocation4 + $0x10] sm:$0xff]  }
  0x20   :  { %v395_v13 = vld [vmem:[#allocation4 + $0x20] sm:$0xff]   ;;  %v398_v16 = vld [vmem:[#allocation4 + $0x8] sm:$0xff]  }
  0x21   :  { %v399_v17 = vld [vmem:[#allocation4] sm:$0xff]  }
  0x22   :  { %340 = vmatpush3.bf16.msra.mxu0 %v384_v2  ;;  %360 = vmatpush3.bf16.msra.mxu1 %v393_v11  ;;  %v300_v18 = vld [vmem:[%s507_s2] ss:$0 sm:$0xff] }
  0x23   :  { %341 = vmatprep.subr.bf16.mxu0 %v452_v0  ;;  %361 = vmatprep.subr.bf16.mxu1 %v452_v0  ;;  %v310_v36 = vld [vmem:[%s509_s4] ss:$0 sm:$0xff] }
  0x26   :  { %342 = vmatpush3.bf16.msra.mxu0 %v385_v3  ;;  %362 = vmatpush3.bf16.msra.mxu1 %v394_v12 }
  0x27   :  { %343 = vmatprep.subr.bf16.mxu0 %v452_v0  ;;  %363 = vmatprep.subr.bf16.mxu1 %v452_v0 }
  0x2a   :  { %344 = vmatpush3.bf16.msra.mxu0 %v386_v5  ;;  %364 = vmatpush3.bf16.msra.mxu1 %v395_v13 }
  0x2b   :  { %345 = vmatprep.subr.bf16.mxu0 %v452_v0  ;;  %365 = vmatprep.subr.bf16.mxu1 %v452_v0 }
  0x2e   :  { %346 = vmatpush3.bf16.msra.mxu0 %v387_v6  ;;  %366 = vmatpush3.bf16.msra.mxu1 %v396_v14 }
  0x2f   :  { %347 = vmatprep.subr.bf16.mxu0 %v452_v0  ;;  %367 = vmatprep.subr.bf16.mxu1 %v452_v0 }
  0x32   :  { %348 = vmatpush3.bf16.msra.mxu0 %v388_v7  ;;  %368 = vmatpush3.bf16.msra.mxu1 %v397_v15 }
  0x33   :  { %349 = vmatprep.subr.bf16.mxu0 %v452_v0  ;;  %369 = vmatprep.subr.bf16.mxu1 %v452_v0 }
  0x36   :  { %350 = vmatpush3.bf16.msra.mxu0 %v389_v8  ;;  %370 = vmatpush3.bf16.msra.mxu1 %v398_v16 }
  0x37   :  { %351 = vmatprep.subr.bf16.mxu0 %v452_v0  ;;  %371 = vmatprep.subr.bf16.mxu1 %v452_v0 }
  0x3a   :  { %352 = vmatpush3.bf16.msra.mxu0 %v390_v9  ;;  %372 = vmatpush3.bf16.msra.mxu1 %v399_v17 }
  0x3d   :  { %354 = vmatmul.mubr.bf16.vlgmr.msra.gmra.mxu0 %v391_v10 }
  0xfd   :  { %v162_v19 = vpop.f32.mrf.mxu0 }
  0xfe   :  { %v163_v20 = vadd.f32 %v300_v18, %v162_v19 }
  0xff   :  { %v355_v21 = vpop.f32.mrf.mxu0 }
 0x100   :  { %v171_v22 = vmul.f32 0.70710677, %v163_v20  ;;  %v169_v30 = vmul.f32 0.5, %v163_v20 }
 0x101   :  { %v165_v23 = vpop.f32.mrf.mxu0 }
 0x102   :  { %400 = verf.f32 %v171_v22  ;;  %v166_v24 = vadd.f32 %v300_v18, %v165_v23 }
 0x103   :  { %v356_v25 = vpop.f32.mrf.mxu0 }
 0x104   :  { %v172_v26 = vmul.f32 0.70710677, %v166_v24  ;;  %v170_v31 = vmul.f32 0.5, %v166_v24 }
 0x106   :  { %402 = verf.f32 %v172_v26 }
 0x10f   :  { %v401_v27 = vpop.eup %400 }
 0x110   :  { %v175_v28 = vadd.f32 1.0, %v401_v27 }
 0x112   :  { %v177_v33 = vmul.f32 %v175_v28, %v169_v30 }
 0x113   :  { %v403_v29 = vpop.eup %402 }
 0x114   :  { %v176_v32 = vadd.f32 1.0, %v403_v29 }
 0x116   :  { %v178_v34 = vmul.f32 %v176_v32, %v170_v31 }
 0x118   :  { %v179_v35 = vpack.c.bf16 %v178_v34, %v177_v33 }
 0x11a   :  { %374 = vmatmul.mubr.bf16.vlgmr.msra.gmra.mxu1 %v179_v35 }
 0x1da   :  { %v285_v37 = vpop.f32.mrf.mxu1 }
 0x1db   :  { %v286_v38 = vadd.f32 %v310_v36, %v285_v37 }
 0x1dc   :  { %v375_v39 = vpop.f32.mrf.mxu1 }
 0x1dd   :  { %292 = vst [vmem:[%s510_s5] sm:$0xff] %v286_v38 }
 0x1de   :  { %v288_v40 = vpop.f32.mrf.mxu1 }
 0x1df   :  { %v289_v41 = vadd.f32 %v310_v36, %v288_v40 }
 0x1e0   :  { %v376_v42 = vpop.f32.mrf.mxu1 }
 0x1e1   :  { %293 = vst [vmem:[%s510_s5 + $0x8] sm:$0xff] %v289_v41 }
 0x1e2   :  { %298 = vsyncpa [#allocation3], 1 }
 0x1e3   :  { %299 = vsyncpa [#allocation5], 1 }

</bundles_post_ra>
